<compile_context>
chip_gen: v6e
topology: v6e:2x2x1
jax: 0.10.0
libtpu: 0.0.40
codegen_flags: <defaults>
</compile_context>

<pallas_src>
import functools

import jax
import jax.numpy as jnp
from jax.experimental import pallas as pl
from jax.experimental.pallas import tpu as pltpu

N_EMBD = 64       # nEmbd
BLOCK_SIZE = 32   # blockSize (max sequence length for the causal mask)


def _attention_head_kernel(x_ref, wqkv_ref, o_ref, *, head_size):
    # x_ref : (bt, T, C) compute dtype (bf16 by default)
    # wqkv_ref : (C, 3H) compute dtype (resident across grid steps)
    # o_ref : (bt, T, H) f32
    bt, T, C = x_ref.shape
    H = head_size
    cdt = x_ref.dtype

    x = x_ref[...]                                      # (bt, T, C)

    # Fused QKV projection as a single 2-D matmul on the flattened batch tile
    # (leading-dim collapse -> no relayout). bf16 operands, f32 accumulation.
    qkv = jnp.dot(x.reshape(bt * T, C), wqkv_ref[...],
                  preferred_element_type=jnp.float32)   # (bt*T, 3H) f32
    qkv = qkv.reshape(bt, T, 3 * H)
    q = qkv[:, :, 0 * H:1 * H].astype(cdt)              # (bt, T, H)
    k = qkv[:, :, 1 * H:2 * H].astype(cdt)
    v = qkv[:, :, 2 * H:3 * H].astype(cdt)

    # Scaled dot-product scores contracted on the head dim via a batched
    # einsum (no materialized k.T -> no XLU transpose on the critical path).
    # Scale matches the module: C**-0.5 with C = nEmbd (not head_size**-0.5).
    scores = jnp.einsum("bth,bsh->bts", q, k,
                        preferred_element_type=jnp.float32) * (C ** -0.5)

    # Causal mask (tril): position i may attend to positions j <= i.  The
    # diagonal is always unmasked, so every row keeps at least one finite
    # score and the -inf fill cannot produce NaNs in the softmax.
    row = jax.lax.broadcasted_iota(jnp.int32, (T, T), 0)
    col = jax.lax.broadcasted_iota(jnp.int32, (T, T), 1)
    scores = jnp.where((row >= col)[None, :, :], scores, -jnp.inf)

    # Numerically stable softmax, entirely in f32.  Exact reciprocal of the
    # (bt, T, 1) denominator (cheap at this shape, avoids the ~1e-3 approx
    # error flagged in review).
    m = jnp.max(scores, axis=-1, keepdims=True)
    p = jnp.exp(scores - m)
    denom = jnp.sum(p, axis=-1, keepdims=True)
    weight = p * pl.reciprocal(denom)                   # (bt, T, T) f32

    # Dropout on attention weights: identity in eval mode.
    # TODO(synk): training-mode dropout via pltpu.prng_seed/stateful_bernoulli.

    o_ref[...] = jnp.einsum("bts,bsh->bth", weight.astype(cdt), v,
                            preferred_element_type=jnp.float32
                            ).astype(o_ref.dtype)


def _pick_batch_tile(B, T, C, itemsize, *, max_block_bytes=1 << 20):
    """Largest divisor of B giving an x block <= ~1 MiB and >= 2 grid steps.

    >= 2 steps lets BlockSpec double-buffering overlap DMA with compute and
    lets v7x shard the "parallel" batch axis over its 2 TensorCores; the
    ~1 MiB cap keeps per-step VMEM use far below v5e's 16 MiB scoped default
    (so no vmem_limit_bytes override is needed on any generation).
    """
    if B <= 1:
        return B
    per_elem = max(1, T * C * itemsize)        # bytes of x per batch element
    cap = max(1, max_block_bytes // per_elem)  # elements in a ~1 MiB block
    cap = min(cap, B // 2)                     # force at least 2 grid steps
    best = 1
    for d in range(1, cap + 1):
        if B % d == 0:
            best = d
    return best


def self_attention_head(x, wq, wk, wv, *, batch_tile=None,
                        compute_dtype=jnp.bfloat16):
    """x: (B, T, C) f32; wq/wk/wv: (C, H) f32 (transposed nn.Linear weights).

    Returns (B, T, H) f32.  `batch_tile` is how many batch elements one grid
    step processes; the default policy targets ~1 MiB x blocks with >= 2 grid
    steps (see _pick_batch_tile).  `compute_dtype` (default bf16) is the MXU
    operand dtype; accumulation and softmax stay f32.
    """
    B, T, C = x.shape
    H = wq.shape[1]
    assert T <= BLOCK_SIZE and C == N_EMBD
    assert wk.shape == (C, H) and wv.shape == (C, H)

    # Fuse the three projection weights into one (C, 3H) MXU operand; cast
    # operands to the compute dtype (bf16 -> 2x MXU throughput, half the DMA).
    w_qkv = jnp.concatenate([wq, wk, wv], axis=1).astype(compute_dtype)
    x_c = x.astype(compute_dtype)

    itemsize = jnp.dtype(compute_dtype).itemsize
    if batch_tile is None:
        batch_tile = _pick_batch_tile(B, T, C, itemsize)
    assert B % batch_tile == 0

    # Advisory cost estimate: QKV projection + score and AV contractions;
    # one exp per score element; HBM traffic for x, w_qkv and the output.
    flops = 2 * B * T * C * (3 * H) + 2 * (2 * B * T * T * H)
    bytes_accessed = (B * T * C * itemsize          # x
                      + C * 3 * H * itemsize        # w_qkv
                      + B * T * H * 4)              # f32 output
    cost = pl.CostEstimate(flops=flops, transcendentals=B * T * T,
                           bytes_accessed=bytes_accessed)

    return pl.pallas_call(
        functools.partial(_attention_head_kernel, head_size=H),
        out_shape=jax.ShapeDtypeStruct((B, T, H), jnp.float32),
        grid_spec=pltpu.PrefetchScalarGridSpec(
            num_scalar_prefetch=0,
            grid=(B // batch_tile,),
            in_specs=[
                pl.BlockSpec((batch_tile, T, C), lambda b: (b, 0, 0)),
                pl.BlockSpec((C, 3 * H), lambda b: (0, 0)),  # weight resident
            ],
            out_specs=pl.BlockSpec((batch_tile, T, H), lambda b: (b, 0, 0)),
        ),
        compiler_params=pltpu.CompilerParams(
            dimension_semantics=("parallel",)),
        cost_estimate=cost,
    )(x_c, w_qkv)


def _reference(x, wq, wk, wv):
    # Pure-JAX f32 reference (matches the PyTorch forward in eval mode).
    B, T, C = x.shape
    q = x @ wq
    k = x @ wk
    v = x @ wv
    scores = jnp.einsum("bth,bsh->bts", q, k) * (C ** -0.5)
    mask = jnp.tril(jnp.ones((T, T), dtype=bool))
    scores = jnp.where(mask[None], scores, -jnp.inf)
    w = jax.nn.softmax(scores, axis=-1)
    return jnp.einsum("bts,bsh->bth", w, v)


if __name__ == "__main__":
    key = jax.random.PRNGKey(0)
    B, T, C, H = 2, 8, N_EMBD, 16   # T <= blockSize=32, C = nEmbd=64, headSize=16

    kx, kq, kk, kv = jax.random.split(key, 4)
    x = jax.random.normal(kx, (B, T, C), dtype=jnp.float32)
    # nn.Linear(nEmbd, headSize, bias=False): weight is (H, C), applied as
    # x @ W^T.  We store the transposed weight (C, H) so the kernel computes
    # x @ W directly.
    scale = 1.0 / (C ** 0.5)
    wq = (jax.random.uniform(kq, (C, H), dtype=jnp.float32) * 2 - 1) * scale
    wk = (jax.random.uniform(kk, (C, H), dtype=jnp.float32) * 2 - 1) * scale
    wv = (jax.random.uniform(kv, (C, H), dtype=jnp.float32) * 2 - 1) * scale

    out = jax.block_until_ready(self_attention_head(x, wq, wk, wv))
    ref = _reference(x, wq, wk, wv)

    assert out.shape == (B, T, H)
    # bf16 MXU operands (f32 accumulation, f32 softmax) vs. pure-f32 reference
    # -> ~1e-2-scale error; tolerance sized accordingly.
    assert jnp.allclose(out, ref, atol=4e-2, rtol=4e-2), "mismatch vs reference"

    print("KERNEL_OK")
</pallas_src>

<mosaic_0001>
module attributes {stable_mosaic.version = 11 : i64} {
  func.func @_attention_head_kernel(%arg0: i32, %arg1: memref<1x8x64xbf16, #tpu.memory_space<vmem>>, %arg2: memref<64x48xbf16, #tpu.memory_space<vmem>>, %arg3: memref<1x8x16xf32, #tpu.memory_space<vmem>>) attributes {dimension_semantics = [#tpu.dimension_semantics<parallel>], iteration_bounds = array<i64: 2>, scalar_prefetch = 0 : i64, scratch_operands = 0 : i64, tpu.core_type = #tpu.core_type<tc>, window_params = [{transform_indices = @transform_0, window_bounds = array<i64: 1, 8, 64>}, {pipeline_mode = #tpu.pipeline_mode<synchronous>, transform_indices = @transform_1, window_bounds = array<i64: 64, 48>}, {transform_indices = @transform_2, window_bounds = array<i64: 1, 8, 16>}]} {
    %c0 = arith.constant 0 : index
    %c0_0 = arith.constant 0 : index
    %c0_1 = arith.constant 0 : index
    %0 = vector.load %arg1[%c0, %c0_0, %c0_1] : memref<1x8x64xbf16, #tpu.memory_space<vmem>>, vector<1x8x64xbf16>
    %1 = vector.shape_cast %0 : vector<1x8x64xbf16> to vector<8x64xbf16>
    %c0_2 = arith.constant 0 : index
    %c0_3 = arith.constant 0 : index
    %2 = vector.load %arg2[%c0_2, %c0_3] : memref<64x48xbf16, #tpu.memory_space<vmem>>, vector<64x48xbf16>
    %cst = arith.constant dense<0.000000e+00> : vector<8x48xf32>
    %3 = tpu.matmul %1, %2, %cst {dimension_numbers = #tpu.dot_dimension_numbers<[1], [0], [0], [1], [0, 0, 1, 1], [], []>} : vector<8x64xbf16>, vector<64x48xbf16>, vector<8x48xf32> -> vector<8x48xf32>
    %4 = vector.shape_cast %3 : vector<8x48xf32> to vector<1x8x48xf32>
    %5 = vector.extract_strided_slice %4 {offsets = [0, 0, 0], sizes = [1, 8, 16], strides = [1, 1, 1]} : vector<1x8x48xf32> to vector<1x8x16xf32>
    %6 = arith.truncf %5 : vector<1x8x16xf32> to vector<1x8x16xbf16>
    %7 = vector.extract_strided_slice %4 {offsets = [0, 0, 16], sizes = [1, 8, 16], strides = [1, 1, 1]} : vector<1x8x48xf32> to vector<1x8x16xf32>
    %8 = arith.truncf %7 : vector<1x8x16xf32> to vector<1x8x16xbf16>
    %9 = vector.extract_strided_slice %4 {offsets = [0, 0, 32], sizes = [1, 8, 16], strides = [1, 1, 1]} : vector<1x8x48xf32> to vector<1x8x16xf32>
    %10 = arith.truncf %9 : vector<1x8x16xf32> to vector<1x8x16xbf16>
    "tpu.trace_start"() <{level = 10 : i32, message = "bth,bsh->bts"}> : () -> ()
    %cst_4 = arith.constant dense<0.000000e+00> : vector<1x8x8xf32>
    %11 = tpu.matmul %6, %8, %cst_4 {dimension_numbers = #tpu.dot_dimension_numbers<[2], [2], [1], [1], [0, 0, 0, 1, 1, 1], [0], [0]>} : vector<1x8x16xbf16>, vector<1x8x16xbf16>, vector<1x8x8xf32> -> vector<1x8x8xf32>
    "tpu.trace_stop"() : () -> ()
    %cst_5 = arith.constant 1.250000e-01 : f32
    %12 = vector.broadcast %cst_5 : f32 to vector<1x8x8xf32>
    %13 = arith.mulf %11, %12 : vector<1x8x8xf32>
    %14 = tpu.iota {dimensions = array<i32: 0>} : vector<8x8xi32>
    %15 = tpu.iota {dimensions = array<i32: 1>} : vector<8x8xi32>
    %16 = arith.cmpi sge, %14, %15 : vector<8x8xi32>
    %17 = vector.shape_cast %16 : vector<8x8xi1> to vector<1x8x8xi1>
    %cst_6 = arith.constant 0xFF800000 : f32
    %18 = vector.broadcast %cst_6 : f32 to vector<1x8x8xf32>
    %19 = arith.select %17, %13, %18 : vector<1x8x8xi1>, vector<1x8x8xf32>
    %cst_7 = arith.constant dense<0xFF800000> : vector<1x8xf32>
    %20 = vector.multi_reduction <maximumf>, %19, %cst_7 [2] : vector<1x8x8xf32> to vector<1x8xf32>
    %21 = vector.shape_cast %20 : vector<1x8xf32> to vector<1x8x1xf32>
    %22 = vector.broadcast %21 : vector<1x8x1xf32> to vector<1x8x8xf32>
    %23 = arith.subf %19, %22 : vector<1x8x8xf32>
    %24 = math.exp %23 : vector<1x8x8xf32>
    %cst_8 = arith.constant dense<0.000000e+00> : vector<1x8xf32>
    %25 = vector.multi_reduction <add>, %24, %cst_8 [2] : vector<1x8x8xf32> to vector<1x8xf32>
    %26 = vector.shape_cast %25 : vector<1x8xf32> to vector<1x8x1xf32>
    %27 = tpu.reciprocal %26 : vector<1x8x1xf32> -> vector<1x8x1xf32>
    %28 = vector.broadcast %27 : vector<1x8x1xf32> to vector<1x8x8xf32>
    %29 = arith.mulf %24, %28 : vector<1x8x8xf32>
    %30 = arith.truncf %29 : vector<1x8x8xf32> to vector<1x8x8xbf16>
    "tpu.trace_start"() <{level = 10 : i32, message = "bts,bsh->bth"}> : () -> ()
    %cst_9 = arith.constant dense<0.000000e+00> : vector<1x8x16xf32>
    %31 = tpu.matmul %30, %10, %cst_9 {dimension_numbers = #tpu.dot_dimension_numbers<[2], [1], [1], [2], [0, 0, 0, 1, 1, 2], [0], [0]>} : vector<1x8x8xbf16>, vector<1x8x16xbf16>, vector<1x8x16xf32> -> vector<1x8x16xf32>
    "tpu.trace_stop"() : () -> ()
    %c0_10 = arith.constant 0 : index
    %c0_11 = arith.constant 0 : index
    %c0_12 = arith.constant 0 : index
    %32 = vector.load %arg3[%c0_10, %c0_11, %c0_12] : memref<1x8x16xf32, #tpu.memory_space<vmem>>, vector<1x8x16xf32>
    tpu.vector_store %arg3[%c0_10, %c0_11, %c0_12], %31 {strides = array<i32>} : memref<1x8x16xf32, #tpu.memory_space<vmem>>, vector<1x8x16xf32>,
    return
  }
  func.func @transform_0(%arg0: i32) -> (i32, i32, i32) {
    %c0_i32 = arith.constant 0 : i32
    %c0_i32_0 = arith.constant 0 : i32
    %c0_i32_1 = arith.constant 0 : i32
    return %arg0, %c0_i32, %c0_i32_0 : i32, i32, i32
  }
  func.func @transform_1(%arg0: i32) -> (i32, i32) {
    %c0_i32 = arith.constant 0 : i32
    %c0_i32_0 = arith.constant 0 : i32
    %c0_i32_1 = arith.constant 0 : i32
    return %c0_i32, %c0_i32_0 : i32, i32
  }
  func.func @transform_2(%arg0: i32) -> (i32, i32, i32) {
    %c0_i32 = arith.constant 0 : i32
    %c0_i32_0 = arith.constant 0 : i32
    %c0_i32_1 = arith.constant 0 : i32
    return %arg0, %c0_i32, %c0_i32_0 : i32, i32, i32
  }
}

</mosaic_0001>

<bundles_post_ra>
// kernel: tpu_custom_call.1
= control target key start
LH: loop header
LB: loop body
LE: loop exit
PB: predicated region body
PF: predicated region fallthrough
CT: control target
= control target key end

     0   :  { %7 = vsyncpa [#allocation3], 0  ;;  %s714_s0 = inlined_call_operand.vmem [shape: bf16[2,8,64], index: 0, kind: input, shape index: {}]   ;;  %s715_s1 = inlined_call_operand.vmem [shape: bf16[64,48], index: 1, kind: input, shape index: {}]   ;;  %s716_s2 = inlined_call_operand.hbm [shape: f32[2,8,16], index: 2, kind: output, shape index: {}]  }
   0x1   :  { %9 = vsyncpa [#allocation3 + $0x1], 0  ;;  %s594_s9 = smov 0   ;;  %s596_s10 = smov 0  }
   0x2   :  { %s598_s11 = smov 0   ;;  %s600_s12 = smov 0  }
   0x3 LB: > { %s615_s13 = sadd.s32 4294967295, %s572_s12   ;;  %s411_s14 = sadd.s32 4294967294, %s572_s12   ;;  %s572_s12 = sphi %s600_s12, %s722_s12   ;;  %s568_s11 = sphi %s598_s11, %s721_s11   ;;  %s564_s10 = sphi %s596_s10, %s720_s10   ;;  %s560_s9 = sphi %s594_s9, %s719_s9  }
   0x4   : > { %s619_s15 = sadd.s32 1, %s572_s12   ;;  %s69_s16 = sadd.s32 1, %s568_s11 }
   0x5   : > { %s66_s17 = ssub.s32 %s572_s12, %s619_s15  ;;  %p79_p0 = scmp.ne.s32.totalorder %s568_s11, %s564_s10 }
   0x6   : > { %p67_p1 = scmp.eq.s32.totalorder %s66_s17, 0  ;;  %p80_p2 = scmp.eq.s32.totalorder %s615_s13, 1 }
   0x7   : > { %p85_p3 = scmp.ne.s32.totalorder %s564_s10, %s560_s9  ;;  %p86_p4 = scmp.eq.s32.totalorder %s411_s14, 1 }
   0x8   : > { %s630_s18 = scalar_select %p67_p1, %s568_s11, %s69_s16  }
   0x9   : > { %p632_p5 = por %p80_p2, %p79_p0  ;;  %p636_p6 = por %p86_p4, %p85_p3 }
   0xa   : > { %p414_p7 = scmp.ge.s32.totalorder %s572_s12, 1  ;;  %p114_p8 = scmp.lt.s32.totalorder %s572_s12, 3 }
   0xc   : > { %p115_p9 = pnand %p414_p7, %p114_p8 }
   0xd   : > { %p135_p10 = scmp.lt.s32.totalorder (!%p115_p9), %s615_s13, 1  ;;  %s576_s6 = smov (!%p115_p9), 112  }
   0xe   : > { %118 = sbr.rel (%p115_p9) target bundleno = 1073 (0x431), region = 28  ;;  %s577_s7 = smov (!%p115_p9), 96  }
   0xf   : > { %s132_s8 = sand.u32 (!%p115_p9), 1, %s564_s10   ;;  %s425_s16 = sshll.u32 (!%p115_p9), %s615_s13, 7 }
  0x10   : > { %s415_s14 = sshll.u32 (!%p115_p9), %s132_s8, 3  ;;  %s672_s24 = scalar_lea.hbm (!%p115_p9), %s716_s2, %s425_s16 }
  0x11   : > { %s134_s17 = scalar_lea.vmem (!%p115_p9), [#allocation2], %s415_s14 }
  0x12   : > { %s352_s21 = sshll.u32 (!%p115_p9), %s134_s17, 4  ;;  %s674_s21 = int_to_ptr.vmem [resolvable:$true] %s352_s21 }
  0x13   : > { %v504_v0 = vld [vmem:[%s715_s1 + $0x18] sm:$0xff]   ;;  %v574_v1 = vmov 0.0   ;;  %v505_v2 = vld [vmem:[%s715_s1 + $0x10] sm:$0xff]   ;;  %vm575_vm0 = vmmov 0   ;;  %s136_s25 = scalar_select %p135_p10, %s615_s13, 1  ;;  %v506_v3 = vld [vmem:[%s715_s1 + $0x8] sm:$0xff]   ;;  %v269_v13 = vlaneseq }
  0x14   : > { %437 = vmatprep.subr.bf16.mxu0 %v574_v1  ;;  %449 = vmatprep.subr.bf16.mxu1 %v574_v1  ;;  %v507_v4 = vld [vmem:[%s715_s1] sm:$0xff]   ;;  %vm173_vm1 = vcmask 523264   ;;  %vm221_vm2 = vcmask 130048   ;;  %vm275_vm4 = vcmask 64512   ;;  %vm293_vm5 = vcmask 1043456   ;;  %s512_s26 = scalar_lea.vmem %s674_s21, 128 }
  0x15   : > { %438 = vmatpush3.bf16.msra.mxu0 %v504_v0  ;;  %445 = vmatprep.mubr.msk.bf16.mxu0 %vm575_vm0, %v574_v1  ;;  %s416_s28 = sshll.u32 %s136_s25, 2  ;;  %v270_v14 = vshrl.u32 %v269_v13, 7  ;;  %v272_v15 = vand.u32 127, %v269_v13  ;;  %s339_s25 = scalar_lea.sflag [#allocation3], %s132_s8 }
  0x16   : > { %439 = vmatprep.subr.bf16.mxu0 %v574_v1  ;;  %451 = vmatprep.mubr.msk.bf16.mxu1 %vm575_vm0, %v574_v1  ;;  %s138_s5 = scalar_lea.vmem %s714_s0, %s416_s28  ;;  %p513_p11 = scmp.ne.s32.totalorder %s674_s21, %s512_s26 }
  0x17   : > { %v140_v5 = vld [vmem:[%s138_s5] sm:$0xf]  ;;  %vm273_vm3 = vcmp.ge.s32.totalorder %v270_v14, %v272_v15  ;;  %s578_s13 = smov [#allocation2]  }
  0x18   : > { %p514_p12 = pnand %p513_p11, %p632_p5  ;;  %s516_s27 = sshll.u32 %s578_s13, 4  ;;  %s517_s27 = int_to_ptr.vmem [resolvable:$false] %s516_s27 }
  0x19   : > { %440 = vmatpush3.bf16.msra.mxu0 %v505_v2  ;;  %s518_s28 = scalar_lea.vmem %s517_s27, 256  ;;  %p519_p0 = scmp.lt.s32.totalorder %s674_s21, %s517_s27 }
  0x1a   : > { %441 = vmatprep.subr.bf16.mxu0 %v574_v1  ;;  %p515_p13 = pneg %p514_p12  ;;  %p520_p1 = scmp.lt.s32.totalorder %s518_s28, %s512_s26 }
  0x1c   : > { %p521_p2 = por %p520_p1, %p519_p0 }
  0x1d   : > { %442 = vmatpush3.bf16.msra.mxu0 %v506_v3 }
  0x1e   : > { %443 = vmatprep.subr.bf16.mxu0 %v574_v1  ;;  %p522_p3 = pnand %p521_p2, %p515_p13 }
  0x21   : > { %444 = vmatpush3.bf16.msra.mxu0 %v507_v4 }
  0x24   : > { %446 = vmatmul.mubr.msk.bf16.vlgmr.msra.gmra.mxu0 %vm173_vm1, %v140_v5 }
  0xe4   : > { %v211_v6 = vpop.f32.mrf.mxu0 }
  0xe5   : > { %v217_v7 = vpack.c.bf16 %v211_v6, %v211_v6 }
  0xe6   : > { %v447_v8 = vpop.f32.mrf.mxu0 }
  0xe7   : > { %219 = vrot.lane.b32.xlu0 %v217_v7, %s576_s6 }
  0xe8   : > { %v214_v9 = vpop.f32.mrf.mxu0 }
  0xea   : > { %v448_v10 = vpop.f32.mrf.mxu0 }
 0x159   : > { %v220_v11 = vpop.permute.xlu0 %219 }
 0x15a   : > { %v226_v12 = vsel %vm221_vm2, %v220_v11, 0 }
 0x15b   : > { %450 = vmatpush3.bf16.xpose.msra.mxu1 %v226_v12 }
 0x15c   : > { %455 = vmatprep.subr.bf16.mxu1 %v574_v1 }
 0x162   : > { %452 = vmatmul.mubr.msk.bf16.vlgmr.msra.gmra.mxu1 %vm221_vm2, %v217_v7 }
 0x163   : > { %457 = vmatprep.mubr.msk.bf16.mxu1 %vm575_vm0, %v574_v1 }
 0x222   : > { %v262_v16 = vpop.f32.mrf.mxu1 }
 0x223   : > { %v268_v17 = vmul.f32 0.125, %v262_v16 }
 0x224   : > { %v453_v18 = vpop.f32.mrf.mxu1 }
 0x225   : > { %v274_v19 = vsel %vm273_vm3, %v268_v17, -inf }
 0x226   : > { %v265_v20 = vpop.f32.mrf.mxu1  ;;  %v276_v21 = vsel %vm275_vm4, %v274_v19, -inf }
 0x227   : > { %277 = vmax.xlane.f32.xlu0 %v276_v21 }
 0x228   : > { %v454_v22 = vpop.f32.mrf.mxu1 }
 0x2b0   : > { %v278_v23 = vpop.xlane.xlu0 %277 }
 0x2b1   : > { %v279_v24 = vsub.f32 %v274_v19, %v278_v23 }
 0x2b3   : > { %v280_v25 = vmul.f32 1.442695, %v279_v24 }
 0x2b5   : > { %508 = vpow2.f32 %v280_v25 }
 0x2c2   : > { %v509_v26 = vpop.eup %508 }
 0x2c3   : > { %v282_v27 = vsel %vm275_vm4, %v509_v26, 0.0 }
 0x2c4   : > { %283 = vadd.xlane.f32.xlu1 %v282_v27 }
 0x2d5   : > { %288 = vrot.lane.b32.xlu1 %v217_v7, %s577_s7 }
 0x34d   : > { %v284_v28 = vpop.xlane.xlu1 %283 }
 0x34e   : > { %510 = vrcp.f32 %v284_v28 }
 0x351   : > { %v289_v29 = vpop.permute.xlu1 %288 }
 0x352   : > { %v295_v30 = vsel %vm293_vm5, %v289_v29, 0 }
 0x353   : > { %456 = vmatpush3.bf16.msra.mxu1 %v295_v30 }
 0x35b   : > { %v511_v31 = vpop.eup %510 }
 0x35c   : > { %v286_v32 = vmul.f32 %v511_v31, %v509_v26 }
 0x35e   : > { %v287_v33 = vpack.c.bf16 %v286_v32, %v286_v32 }
 0x360   : > { %458 = vmatmul.mubr.msk.bf16.vlgmr.msra.gmra.mxu1 %vm275_vm4, %v287_v33 }
 0x420   : > { %v331_v34 = vpop.f32.mrf.mxu1 }
 0x421   : > { %337 = vst.msk [vmem:[%s134_s17] sm:$0xff] %vm221_vm2, %v331_v34 }
 0x422   : > { %v459_v35 = vpop.f32.mrf.mxu1 }
 0x423   : > { %525 = shalt.err (!%p522_p3)
}
 0x424   : > { %s526_s29 = scalar_lea.hbm %s672_s24, 128  ;;  %s530_s4 = scalar_lea.hbm %s716_s2, 256 }
 0x425   : > { %p527_p4 = scmp.ne.s32.totalorder %s672_s24, %s526_s29  ;;  %p531_p9 = scmp.lt.s32.totalorder %s672_s24, %s716_s2 }
 0x426   : > { %p532_p10 = scmp.lt.s32.totalorder %s530_s4, %s526_s29 }
 0x427   : > { %p528_p7 = pnand %p527_p4, %p632_p5 }
 0x428   : > { %p533_p11 = por %p532_p10, %p531_p9 }
 0x429   : > { %p529_p8 = pneg %p528_p7 }
 0x42b   : > { %p534_p12 = pnand %p533_p11, %p529_p8 }
 0x42d   : > { %537 = shalt.err (!%p534_p12)
}
 0x42e   : > { %461 = dma.vmem_to_hbm [thread:$0]  (%p632_p5), %s674_s21, 128, %s672_s24, %s339_s25   ;;  %v334_v36 = vpop.f32.mrf.mxu1 }
 0x430   : > { %v460_v37 = vpop.f32.mrf.mxu1 }
 0x431 PF: > { %p467_p13 = scmp.ge.s32.totalorder %s572_s12, 2  ;;  %s364_s7 = sand.u32 1, %s560_s9  }
 0x432   : > { %s365_s8 = scalar_lea.sflag [#allocation3], %s364_s7 }
 0x433   : > { %p464_p0 = pnand %p467_p13, %p636_p6 }
 0x435   : > { %p465_p1 = pneg %p464_p0 }
 0x437   : > { %555 = dma.done.wait (%p465_p1), %s365_s8, 128  }
 0x438   : > { %557 = vsyncadd (%p465_p1), %s365_s8, 4294967168  ;;  %p12_p5 = scmp.ge.s32.totalorder %s619_s15, 4   ;;  %s719_s9 = smov %s564_s10 }
 0x439   : > { %s720_s10 = smov %s568_s11  ;;  %s721_s11 = smov %s630_s18 }
 0x43a   : > { %s722_s12 = smov %s619_s15  ;;  %14 = sbr.rel (!%p12_p5) target bundleno = 3 (0x3), region = 63 }
 0x43f   :  { %370 = vsyncpa [#allocation3], 1 }
 0x440   :  { %372 = vsyncpa [#allocation3 + $0x1], 1 }

</bundles_post_ra>
